<compile_context>
chip_gen: v7x
topology: tpu7x:2x2x1
jax: 0.10.0
libtpu: 0.0.40
codegen_flags: <defaults>
</compile_context>

<pallas_src>
import jax
import jax.numpy as jnp
from jax import lax
from jax.experimental import pallas as pl
from jax.experimental.pallas import tpu as pltpu


def _round_up(v, m):
    return -(-v // m) * m


def make_refinement_kernel(num_layers, F, T_pad, use_output, hier):
    dilations = [2 ** i for i in range(num_layers)]

    def kernel(*refs):
        it = iter(refs)
        x_ref = next(it)
        if use_output:
            w_in_ref = next(it)
            b_in_ref = next(it)
        w_dil_ref = next(it)   # (3L, F, F) bf16, taps [2d, d, 0] per layer
        b_dil_ref = next(it)   # (L, F, 1)  f32
        w_pw_ref = next(it)    # (L, F, F)  bf16
        b_pw_ref = next(it)    # (L, F, 1)  f32
        pool_ref = next(it) if hier else None
        w_out_ref = next(it)   # (C, F) bf16
        b_out_ref = next(it)   # (C, 1) f32
        f_ref = next(it)       # (1, F, T_out_pad) f32
        out_ref = next(it)     # (1, C, T_out_pad) f32

        x = x_ref[0]                                   # (Cin, T_pad)
        if use_output:
            # conv_1x1: (F, dim) @ (dim, T_pad), bf16 operands, f32 accumulate.
            h = (jnp.dot(w_in_ref[...], x, preferred_element_type=jnp.float32)
                 + b_in_ref[...])
        else:
            h = x                                      # already (F, T_pad) f32

        # Hoisted once: lane (time) index, reused by every causal shift.
        t_lane = lax.broadcasted_iota(jnp.int32, (F, T_pad), 1)

        def shifted_bf16(v, s):
            # y[:, t] = v[:, t - s] for t >= s else 0 (causal left-pad).
            rolled = pltpu.roll(v, shift=s, axis=1)
            return jnp.where(t_lane >= s, rolled, 0.0).astype(jnp.bfloat16)

        for l, d in enumerate(dilations):
            hb = h.astype(jnp.bfloat16)
            # 3-tap dilated causal conv as 3 accumulating K=F matmuls.
            a = (jnp.dot(w_dil_ref[3 * l + 0], shifted_bf16(h, 2 * d),
                         preferred_element_type=jnp.float32)
                 + jnp.dot(w_dil_ref[3 * l + 1], shifted_bf16(h, d),
                           preferred_element_type=jnp.float32)
                 + jnp.dot(w_dil_ref[3 * l + 2], hb,
                           preferred_element_type=jnp.float32)
                 + b_dil_ref[l])
            a = jnp.maximum(a, 0.0)                    # ReLU (f32)
            o = (jnp.dot(w_pw_ref[l], a.astype(jnp.bfloat16),
                         preferred_element_type=jnp.float32)
                 + b_pw_ref[l])
            # TODO(synk): nn.Dropout is identity at inference; training-mode
            # dropout masks are not implemented.
            h = h + o                                  # residual (f32)

        if hier:
            # AvgPool1d(7, stride=3): small shared 0/1 pooling matmul over the
            # lane (time) axis, scaled by 1/7 in f32. Padded lanes (t >= T)
            # have all-zero pool rows so they never contribute.
            f = (jnp.dot(h.astype(jnp.bfloat16), pool_ref[...],
                         preferred_element_type=jnp.float32) * (1.0 / 7.0))
        else:
            f = h                                      # exact f32 features

        f_ref[0] = f.astype(f_ref.dtype)
        out_ref[0] = (jnp.dot(w_out_ref[...], f.astype(jnp.bfloat16),
                              preferred_element_type=jnp.float32)
                      + b_out_ref[...]).astype(out_ref.dtype)

    return kernel


def _build_pool_matrix(T, T_pad, T_out, T_out_pad):
    """(T_pad, T_out_pad) 0/1 bf16 matrix: column j sums time steps 3j..3j+6."""
    t = jnp.arange(T_pad)[:, None]
    j = jnp.arange(T_out_pad)[None, :]
    valid = (j < T_out) & (t >= 3 * j) & (t < 3 * j + 7) & (t < T)
    return valid.astype(jnp.bfloat16)


def refinement_forward(x_nct, packed, *, use_output=True, hier=False):
    """x_nct: (N, dim, T) like PyTorch Conv1d input. Returns (f, logits) in NCT."""
    N, Cin, T = x_nct.shape
    F = packed["num_f_maps"]
    C = packed["num_classes"]
    L = packed["num_layers"]

    T_pad = _round_up(max(T, 128), 128)
    xp = jnp.pad(x_nct, ((0, 0), (0, 0), (0, T_pad - T)))
    # bf16 input when it is immediately consumed by the bf16 conv_1x1 matmul;
    # f32 when it feeds the residual stream directly.
    xp = xp.astype(jnp.bfloat16 if use_output else jnp.float32)

    if hier:
        T_out = (T - 7) // 3 + 1
        T_out_pad = _round_up(max(T_out, 128), 128)
        pool = _build_pool_matrix(T, T_pad, T_out, T_out_pad)
    else:
        T_out, T_out_pad = T, T_pad
        pool = None

    inputs, in_specs = [], []

    def add_resident(a):
        inputs.append(a)
        nd = a.ndim
        in_specs.append(pl.BlockSpec(a.shape, lambda n, _nd=nd: (0,) * _nd))

    # Per-sample input tile, pipelined/double-buffered over the batch grid.
    inputs.append(xp)
    in_specs.append(pl.BlockSpec((1, Cin, T_pad), lambda n: (n, 0, 0)))
    if use_output:
        add_resident(packed["w_in"])
        add_resident(packed["b_in"])
    add_resident(packed["w_dil"])
    add_resident(packed["b_dil"])
    add_resident(packed["w_pw"])
    add_resident(packed["b_pw"])
    if hier:
        add_resident(pool)
    add_resident(packed["w_out"])
    add_resident(packed["b_out"])

    f_pad, out_pad = pl.pallas_call(
        make_refinement_kernel(L, F, T_pad, use_output, hier),
        out_shape=(jax.ShapeDtypeStruct((N, F, T_out_pad), jnp.float32),
                   jax.ShapeDtypeStruct((N, C, T_out_pad), jnp.float32)),
        grid=(N,),
        in_specs=in_specs,
        out_specs=[pl.BlockSpec((1, F, T_out_pad), lambda n: (n, 0, 0)),
                   pl.BlockSpec((1, C, T_out_pad), lambda n: (n, 0, 0))],
        compiler_params=pltpu.CompilerParams(
            dimension_semantics=("parallel",)),
    )(*inputs)

    # Already in PyTorch NCT layout; just drop the lane padding.
    return f_pad[:, :, :T_out], out_pad[:, :, :T_out]


def init_params(key, num_layers, num_f_maps, dim, num_classes):
    """Deterministic synthetic weights in PyTorch-like (out, in[, tap]) layout."""
    keys = jax.random.split(key, 4 + 4 * num_layers)
    k = iter(keys)
    scale = 0.1

    def mat(kk, shape):
        return (scale * jax.random.normal(kk, shape)).astype(jnp.float32)

    params = {
        "w_in": mat(next(k), (num_f_maps, dim)),           # conv_1x1: dim -> F
        "b_in": mat(next(k), (num_f_maps,)),
        "layers": [],
        "w_out": mat(next(k), (num_classes, num_f_maps)),  # conv_out: F -> C
        "b_out": mat(next(k), (num_classes,)),
    }
    for _ in range(num_layers):
        params["layers"].append({
            # taps ordered [applied to shift 2d, shift d, shift 0]
            "wd": mat(next(k), (3, num_f_maps, num_f_maps)),
            "bd": mat(next(k), (num_f_maps,)),
            "w1": mat(next(k), (num_f_maps, num_f_maps)),
            "b1": mat(next(k), (num_f_maps,)),
        })
    return params


def pack_params(raw, matmul_dtype=jnp.bfloat16):
    """Pack raw params into the contiguous arrays the kernel consumes."""
    F = raw["w_in"].shape[0]
    C = raw["w_out"].shape[0]
    L = len(raw["layers"])

    w_dil = jnp.concatenate([lp["wd"] for lp in raw["layers"]],
                            axis=0).astype(matmul_dtype)              # (3L, F, F)
    w_pw = jnp.stack([lp["w1"] for lp in raw["layers"]],
                     axis=0).astype(matmul_dtype)                     # (L, F, F)
    b_dil = jnp.stack([lp["bd"] for lp in raw["layers"]],
                      axis=0).astype(jnp.float32)[:, :, None]         # (L, F, 1)
    b_pw = jnp.stack([lp["b1"] for lp in raw["layers"]],
                     axis=0).astype(jnp.float32)[:, :, None]          # (L, F, 1)

    return {
        "num_layers": L, "num_f_maps": F, "num_classes": C,
        "w_in": raw["w_in"].astype(matmul_dtype),                     # (F, dim)
        "b_in": raw["b_in"].astype(jnp.float32)[:, None],             # (F, 1)
        "w_dil": w_dil, "b_dil": b_dil, "w_pw": w_pw, "b_pw": b_pw,
        "w_out": raw["w_out"].astype(matmul_dtype),                   # (C, F)
        "b_out": raw["b_out"].astype(jnp.float32)[:, None],           # (C, 1)
    }


def reference_forward(x_nct, raw, *, use_output=True, hier=False):
    """Pure-JAX f32 reference mirroring the PyTorch math (inference mode)."""
    x = x_nct.astype(jnp.float32)                     # (N, Cin, T)
    T = x.shape[2]

    def shift(a, s):
        if s == 0:
            return a
        return jnp.pad(a, ((0, 0), (0, 0), (s, 0)))[:, :, :T]

    if use_output:
        h = jnp.einsum('oi,nit->not', raw["w_in"], x) + raw["b_in"][None, :, None]
    else:
        h = x
    for l, lp in enumerate(raw["layers"]):
        d = 2 ** l
        a = (jnp.einsum('oi,nit->not', lp["wd"][0], shift(h, 2 * d))
             + jnp.einsum('oi,nit->not', lp["wd"][1], shift(h, d))
             + jnp.einsum('oi,nit->not', lp["wd"][2], h)
             + lp["bd"][None, :, None])
        a = jnp.maximum(a, 0.0)
        h = h + jnp.einsum('oi,nit->not', lp["w1"], a) + lp["b1"][None, :, None]

    if hier:
        T_out = (T - 7) // 3 + 1
        f = jnp.stack([h[:, :, 3 * j:3 * j + 7].mean(axis=-1)
                       for j in range(T_out)], axis=-1)
    else:
        f = h
    logits = jnp.einsum('oi,nit->not', raw["w_out"], f) + raw["b_out"][None, :, None]
    return f, logits


if __name__ == "__main__":
    # Refinement(num_layers, num_f_maps, dim, num_classes) at small shapes.
    num_layers, num_f_maps, dim, num_classes = 3, 32, 16, 8
    N, T = 2, 64

    key = jax.random.PRNGKey(0)
    kx, kp = jax.random.split(key)
    x = jax.random.normal(kx, (N, dim, T), dtype=jnp.float32)      # NCT
    raw = init_params(kp, num_layers, num_f_maps, dim, num_classes)
    packed = pack_params(raw)

    tol = dict(rtol=2e-2, atol=2e-2)   # bf16 matmul operands vs f32 reference

    # Path 1: args.output=True, args.hier=False
    f, logits = refinement_forward(x, packed, use_output=True, hier=False)
    f = jax.block_until_ready(f)
    logits = jax.block_until_ready(logits)
    rf, rl = reference_forward(x, raw, use_output=True, hier=False)
    assert f.shape == (N, num_f_maps, T)
    assert logits.shape == (N, num_classes, T)
    assert jnp.allclose(f, rf, **tol)
    assert jnp.allclose(logits, rl, **tol)

    # Path 2: args.output=True, args.hier=True (AvgPool1d(7, stride=3))
    f_h, logits_h = refinement_forward(x, packed, use_output=True, hier=True)
    f_h = jax.block_until_ready(f_h)
    logits_h = jax.block_until_ready(logits_h)
    rf_h, rl_h = reference_forward(x, raw, use_output=True, hier=True)
    T_out = (T - 7) // 3 + 1
    assert f_h.shape == (N, num_f_maps, T_out)
    assert logits_h.shape == (N, num_classes, T_out)
    assert jnp.allclose(f_h, rf_h, **tol)
    assert jnp.allclose(logits_h, rl_h, **tol)

    # Path 3: args.output=False (input already has num_f_maps channels)
    x2 = jax.random.normal(jax.random.PRNGKey(1), (N, num_f_maps, T),
                           dtype=jnp.float32)
    f2, logits2 = refinement_forward(x2, packed, use_output=False, hier=False)
    f2 = jax.block_until_ready(f2)
    logits2 = jax.block_until_ready(logits2)
    rf2, rl2 = reference_forward(x2, raw, use_output=False, hier=False)
    assert jnp.allclose(f2, rf2, **tol)
    assert jnp.allclose(logits2, rl2, **tol)

    print("KERNEL_OK")
</pallas_src>

<mosaic_0001>
module attributes {stable_mosaic.version = 11 : i64} {
  func.func @kernel(%arg0: i32, %arg1: memref<1x16x128xbf16, #tpu.memory_space<vmem>>, %arg2: memref<32x16xbf16, #tpu.memory_space<vmem>>, %arg3: memref<32x1xf32, #tpu.memory_space<vmem>>, %arg4: memref<9x32x32xbf16, #tpu.memory_space<vmem>>, %arg5: memref<3x32x1xf32, #tpu.memory_space<vmem>>, %arg6: memref<3x32x32xbf16, #tpu.memory_space<vmem>>, %arg7: memref<3x32x1xf32, #tpu.memory_space<vmem>>, %arg8: memref<8x32xbf16, #tpu.memory_space<vmem>>, %arg9: memref<8x1xf32, #tpu.memory_space<vmem>>, %arg10: memref<1x32x128xf32, #tpu.memory_space<vmem>>, %arg11: memref<1x8x128xf32, #tpu.memory_space<vmem>>) attributes {dimension_semantics = [#tpu.dimension_semantics<parallel>], iteration_bounds = array<i64: 2>, scalar_prefetch = 0 : i64, scratch_operands = 0 : i64, tpu.core_type = #tpu.core_type<tc>, window_params = [{transform_indices = @transform_0, window_bounds = array<i64: 1, 16, 128>}, {pipeline_mode = #tpu.pipeline_mode<synchronous>, transform_indices = @transform_1, window_bounds = array<i64: 32, 16>}, {pipeline_mode = #tpu.pipeline_mode<synchronous>, transform_indices = @transform_2, window_bounds = array<i64: 32, 1>}, {pipeline_mode = #tpu.pipeline_mode<synchronous>, transform_indices = @transform_3, window_bounds = array<i64: 9, 32, 32>}, {pipeline_mode = #tpu.pipeline_mode<synchronous>, transform_indices = @transform_4, window_bounds = array<i64: 3, 32, 1>}, {pipeline_mode = #tpu.pipeline_mode<synchronous>, transform_indices = @transform_5, window_bounds = array<i64: 3, 32, 32>}, {pipeline_mode = #tpu.pipeline_mode<synchronous>, transform_indices = @transform_6, window_bounds = array<i64: 3, 32, 1>}, {pipeline_mode = #tpu.pipeline_mode<synchronous>, transform_indices = @transform_7, window_bounds = array<i64: 8, 32>}, {pipeline_mode = #tpu.pipeline_mode<synchronous>, transform_indices = @transform_8, window_bounds = array<i64: 8, 1>}, {transform_indices = @transform_9, window_bounds = array<i64: 1, 32, 128>}, {transform_indices = @transform_10, window_bounds = array<i64: 1, 8, 128>}]} {
    %c0 = arith.constant 0 : index
    %c0_0 = arith.constant 0 : index
    %c0_1 = arith.constant 0 : index
    %0 = vector.load %arg1[%c0, %c0_0, %c0_1] : memref<1x16x128xbf16, #tpu.memory_space<vmem>>, vector<1x16x128xbf16>
    %1 = vector.shape_cast %0 : vector<1x16x128xbf16> to vector<16x128xbf16>
    %c0_2 = arith.constant 0 : index
    %c0_3 = arith.constant 0 : index
    %2 = vector.load %arg2[%c0_2, %c0_3] : memref<32x16xbf16, #tpu.memory_space<vmem>>, vector<32x16xbf16>
    %cst = arith.constant dense<0.000000e+00> : vector<32x128xf32>
    %3 = tpu.matmul %2, %1, %cst {dimension_numbers = #tpu.dot_dimension_numbers<[1], [0], [0], [1], [0, 0, 1, 1], [], []>} : vector<32x16xbf16>, vector<16x128xbf16>, vector<32x128xf32> -> vector<32x128xf32>
    %c0_4 = arith.constant 0 : index
    %c0_5 = arith.constant 0 : index
    %4 = vector.load %arg3[%c0_4, %c0_5] : memref<32x1xf32, #tpu.memory_space<vmem>>, vector<32x1xf32>
    %5 = vector.broadcast %4 : vector<32x1xf32> to vector<32x128xf32>
    %6 = arith.addf %3, %5 : vector<32x128xf32>
    %7 = tpu.iota {dimensions = array<i32: 1>} : vector<32x128xi32>
    %8 = arith.truncf %6 : vector<32x128xf32> to vector<32x128xbf16>
    %c0_6 = arith.constant 0 : index
    %c0_7 = arith.constant 0 : index
    %c0_8 = arith.constant 0 : index
    %9 = vector.load %arg4[%c0_6, %c0_7, %c0_8] : memref<9x32x32xbf16, #tpu.memory_space<vmem>>, vector<1x32x32xbf16>
    %10 = vector.shape_cast %9 : vector<1x32x32xbf16> to vector<32x32xbf16>
    %c2_i32 = arith.constant 2 : i32
    %11 = tpu.dynamic_rotate %6 by %c2_i32 dim 1 : vector<32x128xf32>, i32 -> vector<32x128xf32>
    %c2_i32_9 = arith.constant 2 : i32
    %12 = vector.broadcast %c2_i32_9 : i32 to vector<32x128xi32>
    %13 = arith.cmpi sge, %7, %12 : vector<32x128xi32>
    %cst_10 = arith.constant 0.000000e+00 : f32
    %14 = vector.broadcast %cst_10 : f32 to vector<32x128xf32>
    %15 = arith.select %13, %11, %14 : vector<32x128xi1>, vector<32x128xf32>
    %16 = arith.truncf %15 : vector<32x128xf32> to vector<32x128xbf16>
    %cst_11 = arith.constant dense<0.000000e+00> : vector<32x128xf32>
    %17 = tpu.matmul %10, %16, %cst_11 {dimension_numbers = #tpu.dot_dimension_numbers<[1], [0], [0], [1], [0, 0, 1, 1], [], []>} : vector<32x32xbf16>, vector<32x128xbf16>, vector<32x128xf32> -> vector<32x128xf32>
    %c1 = arith.constant 1 : index
    %c0_12 = arith.constant 0 : index
    %c0_13 = arith.constant 0 : index
    %18 = vector.load %arg4[%c1, %c0_12, %c0_13] : memref<9x32x32xbf16, #tpu.memory_space<vmem>>, vector<1x32x32xbf16>
    %19 = vector.shape_cast %18 : vector<1x32x32xbf16> to vector<32x32xbf16>
    %c1_i32 = arith.constant 1 : i32
    %20 = tpu.dynamic_rotate %6 by %c1_i32 dim 1 : vector<32x128xf32>, i32 -> vector<32x128xf32>
    %c1_i32_14 = arith.constant 1 : i32
    %21 = vector.broadcast %c1_i32_14 : i32 to vector<32x128xi32>
    %22 = arith.cmpi sge, %7, %21 : vector<32x128xi32>
    %cst_15 = arith.constant 0.000000e+00 : f32
    %23 = vector.broadcast %cst_15 : f32 to vector<32x128xf32>
    %24 = arith.select %22, %20, %23 : vector<32x128xi1>, vector<32x128xf32>
    %25 = arith.truncf %24 : vector<32x128xf32> to vector<32x128xbf16>
    %cst_16 = arith.constant dense<0.000000e+00> : vector<32x128xf32>
    %26 = tpu.matmul %19, %25, %cst_16 {dimension_numbers = #tpu.dot_dimension_numbers<[1], [0], [0], [1], [0, 0, 1, 1], [], []>} : vector<32x32xbf16>, vector<32x128xbf16>, vector<32x128xf32> -> vector<32x128xf32>
    %27 = arith.addf %17, %26 : vector<32x128xf32>
    %c2 = arith.constant 2 : index
    %c0_17 = arith.constant 0 : index
    %c0_18 = arith.constant 0 : index
    %28 = vector.load %arg4[%c2, %c0_17, %c0_18] : memref<9x32x32xbf16, #tpu.memory_space<vmem>>, vector<1x32x32xbf16>
    %29 = vector.shape_cast %28 : vector<1x32x32xbf16> to vector<32x32xbf16>
    %cst_19 = arith.constant dense<0.000000e+00> : vector<32x128xf32>
    %30 = tpu.matmul %29, %8, %cst_19 {dimension_numbers = #tpu.dot_dimension_numbers<[1], [0], [0], [1], [0, 0, 1, 1], [], []>} : vector<32x32xbf16>, vector<32x128xbf16>, vector<32x128xf32> -> vector<32x128xf32>
    %31 = arith.addf %27, %30 : vector<32x128xf32>
    %c0_20 = arith.constant 0 : index
    %c0_21 = arith.constant 0 : index
    %c0_22 = arith.constant 0 : index
    %32 = vector.load %arg5[%c0_20, %c0_21, %c0_22] : memref<3x32x1xf32, #tpu.memory_space<vmem>>, vector<1x32x1xf32>
    %33 = vector.shape_cast %32 : vector<1x32x1xf32> to vector<32x1xf32>
    %34 = vector.broadcast %33 : vector<32x1xf32> to vector<32x128xf32>
    %35 = arith.addf %31, %34 : vector<32x128xf32>
    %cst_23 = arith.constant 0.000000e+00 : f32
    %36 = vector.broadcast %cst_23 : f32 to vector<32x128xf32>
    %37 = arith.maximumf %35, %36 : vector<32x128xf32>
    %c0_24 = arith.constant 0 : index
    %c0_25 = arith.constant 0 : index
    %c0_26 = arith.constant 0 : index
    %38 = vector.load %arg6[%c0_24, %c0_25, %c0_26] : memref<3x32x32xbf16, #tpu.memory_space<vmem>>, vector<1x32x32xbf16>
    %39 = vector.shape_cast %38 : vector<1x32x32xbf16> to vector<32x32xbf16>
    %40 = arith.truncf %37 : vector<32x128xf32> to vector<32x128xbf16>
    %cst_27 = arith.constant dense<0.000000e+00> : vector<32x128xf32>
    %41 = tpu.matmul %39, %40, %cst_27 {dimension_numbers = #tpu.dot_dimension_numbers<[1], [0], [0], [1], [0, 0, 1, 1], [], []>} : vector<32x32xbf16>, vector<32x128xbf16>, vector<32x128xf32> -> vector<32x128xf32>
    %c0_28 = arith.constant 0 : index
    %c0_29 = arith.constant 0 : index
    %c0_30 = arith.constant 0 : index
    %42 = vector.load %arg7[%c0_28, %c0_29, %c0_30] : memref<3x32x1xf32, #tpu.memory_space<vmem>>, vector<1x32x1xf32>
    %43 = vector.shape_cast %42 : vector<1x32x1xf32> to vector<32x1xf32>
    %44 = vector.broadcast %43 : vector<32x1xf32> to vector<32x128xf32>
    %45 = arith.addf %41, %44 : vector<32x128xf32>
    %46 = arith.addf %6, %45 : vector<32x128xf32>
    %47 = arith.truncf %46 : vector<32x128xf32> to vector<32x128xbf16>
    %c3 = arith.constant 3 : index
    %c0_31 = arith.constant 0 : index
    %c0_32 = arith.constant 0 : index
    %48 = vector.load %arg4[%c3, %c0_31, %c0_32] : memref<9x32x32xbf16, #tpu.memory_space<vmem>>, vector<1x32x32xbf16>
    %49 = vector.shape_cast %48 : vector<1x32x32xbf16> to vector<32x32xbf16>
    %c4_i32 = arith.constant 4 : i32
    %50 = tpu.dynamic_rotate %46 by %c4_i32 dim 1 : vector<32x128xf32>, i32 -> vector<32x128xf32>
    %c4_i32_33 = arith.constant 4 : i32
    %51 = vector.broadcast %c4_i32_33 : i32 to vector<32x128xi32>
    %52 = arith.cmpi sge, %7, %51 : vector<32x128xi32>
    %cst_34 = arith.constant 0.000000e+00 : f32
    %53 = vector.broadcast %cst_34 : f32 to vector<32x128xf32>
    %54 = arith.select %52, %50, %53 : vector<32x128xi1>, vector<32x128xf32>
    %55 = arith.truncf %54 : vector<32x128xf32> to vector<32x128xbf16>
    %cst_35 = arith.constant dense<0.000000e+00> : vector<32x128xf32>
    %56 = tpu.matmul %49, %55, %cst_35 {dimension_numbers = #tpu.dot_dimension_numbers<[1], [0], [0], [1], [0, 0, 1, 1], [], []>} : vector<32x32xbf16>, vector<32x128xbf16>, vector<32x128xf32> -> vector<32x128xf32>
    %c4 = arith.constant 4 : index
    %c0_36 = arith.constant 0 : index
    %c0_37 = arith.constant 0 : index
    %57 = vector.load %arg4[%c4, %c0_36, %c0_37] : memref<9x32x32xbf16, #tpu.memory_space<vmem>>, vector<1x32x32xbf16>
    %58 = vector.shape_cast %57 : vector<1x32x32xbf16> to vector<32x32xbf16>
    %c2_i32_38 = arith.constant 2 : i32
    %59 = tpu.dynamic_rotate %46 by %c2_i32_38 dim 1 : vector<32x128xf32>, i32 -> vector<32x128xf32>
    %c2_i32_39 = arith.constant 2 : i32
    %60 = vector.broadcast %c2_i32_39 : i32 to vector<32x128xi32>
    %61 = arith.cmpi sge, %7, %60 : vector<32x128xi32>
    %cst_40 = arith.constant 0.000000e+00 : f32
    %62 = vector.broadcast %cst_40 : f32 to vector<32x128xf32>
    %63 = arith.select %61, %59, %62 : vector<32x128xi1>, vector<32x128xf32>
    %64 = arith.truncf %63 : vector<32x128xf32> to vector<32x128xbf16>
    %cst_41 = arith.constant dense<0.000000e+00> : vector<32x128xf32>
    %65 = tpu.matmul %58, %64, %cst_41 {dimension_numbers = #tpu.dot_dimension_numbers<[1], [0], [0], [1], [0, 0, 1, 1], [], []>} : vector<32x32xbf16>, vector<32x128xbf16>, vector<32x128xf32> -> vector<32x128xf32>
    %66 = arith.addf %56, %65 : vector<32x128xf32>
    %c5 = arith.constant 5 : index
    %c0_42 = arith.constant 0 : index
    %c0_43 = arith.constant 0 : index
    %67 = vector.load %arg4[%c5, %c0_42, %c0_43] : memref<9x32x32xbf16, #tpu.memory_space<vmem>>, vector<1x32x32xbf16>
    %68 = vector.shape_cast %67 : vector<1x32x32xbf16> to vector<32x32xbf16>
    %cst_44 = arith.constant dense<0.000000e+00> : vector<32x128xf32>
    %69 = tpu.matmul %68, %47, %cst_44 {dimension_numbers = #tpu.dot_dimension_numbers<[1], [0], [0], [1], [0, 0, 1, 1], [], []>} : vector<32x32xbf16>, vector<32x128xbf16>, vector<32x128xf32> -> vector<32x128xf32>
    %70 = arith.addf %66, %69 : vector<32x128xf32>
    %c1_45 = arith.constant 1 : index
    %c0_46 = arith.constant 0 : index
    %c0_47 = arith.constant 0 : index
    %71 = vector.load %arg5[%c1_45, %c0_46, %c0_47] : memref<3x32x1xf32, #tpu.memory_space<vmem>>, vector<1x32x1xf32>
    %72 = vector.shape_cast %71 : vector<1x32x1xf32> to vector<32x1xf32>
    %73 = vector.broadcast %72 : vector<32x1xf32> to vector<32x128xf32>
    %74 = arith.addf %70, %73 : vector<32x128xf32>
    %cst_48 = arith.constant 0.000000e+00 : f32
    %75 = vector.broadcast %cst_48 : f32 to vector<32x128xf32>
    %76 = arith.maximumf %74, %75 : vector<32x128xf32>
    %c1_49 = arith.constant 1 : index
    %c0_50 = arith.constant 0 : index
    %c0_51 = arith.constant 0 : index
    %77 = vector.load %arg6[%c1_49, %c0_50, %c0_51] : memref<3x32x32xbf16, #tpu.memory_space<vmem>>, vector<1x32x32xbf16>
    %78 = vector.shape_cast %77 : vector<1x32x32xbf16> to vector<32x32xbf16>
    %79 = arith.truncf %76 : vector<32x128xf32> to vector<32x128xbf16>
    %cst_52 = arith.constant dense<0.000000e+00> : vector<32x128xf32>
    %80 = tpu.matmul %78, %79, %cst_52 {dimension_numbers = #tpu.dot_dimension_numbers<[1], [0], [0], [1], [0, 0, 1, 1], [], []>} : vector<32x32xbf16>, vector<32x128xbf16>, vector<32x128xf32> -> vector<32x128xf32>
    %c1_53 = arith.constant 1 : index
    %c0_54 = arith.constant 0 : index
    %c0_55 = arith.constant 0 : index
    %81 = vector.load %arg7[%c1_53, %c0_54, %c0_55] : memref<3x32x1xf32, #tpu.memory_space<vmem>>, vector<1x32x1xf32>
    %82 = vector.shape_cast %81 : vector<1x32x1xf32> to vector<32x1xf32>
    %83 = vector.broadcast %82 : vector<32x1xf32> to vector<32x128xf32>
    %84 = arith.addf %80, %83 : vector<32x128xf32>
    %85 = arith.addf %46, %84 : vector<32x128xf32>
    %86 = arith.truncf %85 : vector<32x128xf32> to vector<32x128xbf16>
    %c6 = arith.constant 6 : index
    %c0_56 = arith.constant 0 : index
    %c0_57 = arith.constant 0 : index
    %87 = vector.load %arg4[%c6, %c0_56, %c0_57] : memref<9x32x32xbf16, #tpu.memory_space<vmem>>, vector<1x32x32xbf16>
    %88 = vector.shape_cast %87 : vector<1x32x32xbf16> to vector<32x32xbf16>
    %c8_i32 = arith.constant 8 : i32
    %89 = tpu.dynamic_rotate %85 by %c8_i32 dim 1 : vector<32x128xf32>, i32 -> vector<32x128xf32>
    %c8_i32_58 = arith.constant 8 : i32
    %90 = vector.broadcast %c8_i32_58 : i32 to vector<32x128xi32>
    %91 = arith.cmpi sge, %7, %90 : vector<32x128xi32>
    %cst_59 = arith.constant 0.000000e+00 : f32
    %92 = vector.broadcast %cst_59 : f32 to vector<32x128xf32>
    %93 = arith.select %91, %89, %92 : vector<32x128xi1>, vector<32x128xf32>
    %94 = arith.truncf %93 : vector<32x128xf32> to vector<32x128xbf16>
    %cst_60 = arith.constant dense<0.000000e+00> : vector<32x128xf32>
    %95 = tpu.matmul %88, %94, %cst_60 {dimension_numbers = #tpu.dot_dimension_numbers<[1], [0], [0], [1], [0, 0, 1, 1], [], []>} : vector<32x32xbf16>, vector<32x128xbf16>, vector<32x128xf32> -> vector<32x128xf32>
    %c7 = arith.constant 7 : index
    %c0_61 = arith.constant 0 : index
    %c0_62 = arith.constant 0 : index
    %96 = vector.load %arg4[%c7, %c0_61, %c0_62] : memref<9x32x32xbf16, #tpu.memory_space<vmem>>, vector<1x32x32xbf16>
    %97 = vector.shape_cast %96 : vector<1x32x32xbf16> to vector<32x32xbf16>
    %c4_i32_63 = arith.constant 4 : i32
    %98 = tpu.dynamic_rotate %85 by %c4_i32_63 dim 1 : vector<32x128xf32>, i32 -> vector<32x128xf32>
    %c4_i32_64 = arith.constant 4 : i32
    %99 = vector.broadcast %c4_i32_64 : i32 to vector<32x128xi32>
    %100 = arith.cmpi sge, %7, %99 : vector<32x128xi32>
    %cst_65 = arith.constant 0.000000e+00 : f32
    %101 = vector.broadcast %cst_65 : f32 to vector<32x128xf32>
    %102 = arith.select %100, %98, %101 : vector<32x128xi1>, vector<32x128xf32>
    %103 = arith.truncf %102 : vector<32x128xf32> to vector<32x128xbf16>
    %cst_66 = arith.constant dense<0.000000e+00> : vector<32x128xf32>
    %104 = tpu.matmul %97, %103, %cst_66 {dimension_numbers = #tpu.dot_dimension_numbers<[1], [0], [0], [1], [0, 0, 1, 1], [], []>} : vector<32x32xbf16>, vector<32x128xbf16>, vector<32x128xf32> -> vector<32x128xf32>
    %105 = arith.addf %95, %104 : vector<32x128xf32>
    %c8 = arith.constant 8 : index
    %c0_67 = arith.constant 0 : index
    %c0_68 = arith.constant 0 : index
    %106 = vector.load %arg4[%c8, %c0_67, %c0_68] : memref<9x32x32xbf16, #tpu.memory_space<vmem>>, vector<1x32x32xbf16>
    %107 = vector.shape_cast %106 : vector<1x32x32xbf16> to vector<32x32xbf16>
    %cst_69 = arith.constant dense<0.000000e+00> : vector<32x128xf32>
    %108 = tpu.matmul %107, %86, %cst_69 {dimension_numbers = #tpu.dot_dimension_numbers<[1], [0], [0], [1], [0, 0, 1, 1], [], []>} : vector<32x32xbf16>, vector<32x128xbf16>, vector<32x128xf32> -> vector<32x128xf32>
    %109 = arith.addf %105, %108 : vector<32x128xf32>
    %c2_70 = arith.constant 2 : index
    %c0_71 = arith.constant 0 : index
    %c0_72 = arith.constant 0 : index
    %110 = vector.load %arg5[%c2_70, %c0_71, %c0_72] : memref<3x32x1xf32, #tpu.memory_space<vmem>>, vector<1x32x1xf32>
    %111 = vector.shape_cast %110 : vector<1x32x1xf32> to vector<32x1xf32>
    %112 = vector.broadcast %111 : vector<32x1xf32> to vector<32x128xf32>
    %113 = arith.addf %109, %112 : vector<32x128xf32>
    %cst_73 = arith.constant 0.000000e+00 : f32
    %114 = vector.broadcast %cst_73 : f32 to vector<32x128xf32>
    %115 = arith.maximumf %113, %114 : vector<32x128xf32>
    %c2_74 = arith.constant 2 : index
    %c0_75 = arith.constant 0 : index
    %c0_76 = arith.constant 0 : index
    %116 = vector.load %arg6[%c2_74, %c0_75, %c0_76] : memref<3x32x32xbf16, #tpu.memory_space<vmem>>, vector<1x32x32xbf16>
    %117 = vector.shape_cast %116 : vector<1x32x32xbf16> to vector<32x32xbf16>
    %118 = arith.truncf %115 : vector<32x128xf32> to vector<32x128xbf16>
    %cst_77 = arith.constant dense<0.000000e+00> : vector<32x128xf32>
    %119 = tpu.matmul %117, %118, %cst_77 {dimension_numbers = #tpu.dot_dimension_numbers<[1], [0], [0], [1], [0, 0, 1, 1], [], []>} : vector<32x32xbf16>, vector<32x128xbf16>, vector<32x128xf32> -> vector<32x128xf32>
    %c2_78 = arith.constant 2 : index
    %c0_79 = arith.constant 0 : index
    %c0_80 = arith.constant 0 : index
    %120 = vector.load %arg7[%c2_78, %c0_79, %c0_80] : memref<3x32x1xf32, #tpu.memory_space<vmem>>, vector<1x32x1xf32>
    %121 = vector.shape_cast %120 : vector<1x32x1xf32> to vector<32x1xf32>
    %122 = vector.broadcast %121 : vector<32x1xf32> to vector<32x128xf32>
    %123 = arith.addf %119, %122 : vector<32x128xf32>
    %124 = arith.addf %85, %123 : vector<32x128xf32>
    %c0_81 = arith.constant 0 : index
    %c0_82 = arith.constant 0 : index
    %c0_83 = arith.constant 0 : index
    %125 = vector.load %arg10[%c0_81, %c0_82, %c0_83] : memref<1x32x128xf32, #tpu.memory_space<vmem>>, vector<1x32x128xf32>
    %126 = vector.shape_cast %125 : vector<1x32x128xf32> to vector<32x128xf32>
    %127 = vector.shape_cast %124 : vector<32x128xf32> to vector<1x32x128xf32>
    tpu.vector_store %arg10[%c0_81, %c0_82, %c0_83], %127 {strides = array<i32>} : memref<1x32x128xf32, #tpu.memory_space<vmem>>, vector<1x32x128xf32>,
    %c0_84 = arith.constant 0 : index
    %c0_85 = arith.constant 0 : index
    %128 = vector.load %arg8[%c0_84, %c0_85] : memref<8x32xbf16, #tpu.memory_space<vmem>>, vector<8x32xbf16>
    %129 = arith.truncf %124 : vector<32x128xf32> to vector<32x128xbf16>
    %cst_86 = arith.constant dense<0.000000e+00> : vector<8x128xf32>
    %130 = tpu.matmul %128, %129, %cst_86 {dimension_numbers = #tpu.dot_dimension_numbers<[1], [0], [0], [1], [0, 0, 1, 1], [], []>} : vector<8x32xbf16>, vector<32x128xbf16>, vector<8x128xf32> -> vector<8x128xf32>
    %c0_87 = arith.constant 0 : index
    %c0_88 = arith.constant 0 : index
    %131 = vector.load %arg9[%c0_87, %c0_88] : memref<8x1xf32, #tpu.memory_space<vmem>>, vector<8x1xf32>
    %132 = vector.broadcast %131 : vector<8x1xf32> to vector<8x128xf32>
    %133 = arith.addf %130, %132 : vector<8x128xf32>
    %c0_89 = arith.constant 0 : index
    %c0_90 = arith.constant 0 : index
    %c0_91 = arith.constant 0 : index
    %134 = vector.load %arg11[%c0_89, %c0_90, %c0_91] : memref<1x8x128xf32, #tpu.memory_space<vmem>>, vector<1x8x128xf32>
    %135 = vector.shape_cast %134 : vector<1x8x128xf32> to vector<8x128xf32>
    %136 = vector.shape_cast %133 : vector<8x128xf32> to vector<1x8x128xf32>
    tpu.vector_store %arg11[%c0_89, %c0_90, %c0_91], %136 {strides = array<i32>} : memref<1x8x128xf32, #tpu.memory_space<vmem>>, vector<1x8x128xf32>,
    return
  }
  func.func @transform_0(%arg0: i32) -> (i32, i32, i32) {
    %c0_i32 = arith.constant 0 : i32
    %c0_i32_0 = arith.constant 0 : i32
    %c0_i32_1 = arith.constant 0 : i32
    return %arg0, %c0_i32, %c0_i32_0 : i32, i32, i32
  }
  func.func @transform_1(%arg0: i32) -> (i32, i32) {
    %c0_i32 = arith.constant 0 : i32
    %c0_i32_0 = arith.constant 0 : i32
    %c0_i32_1 = arith.constant 0 : i32
    return %c0_i32, %c0_i32_0 : i32, i32
  }
  func.func @transform_2(%arg0: i32) -> (i32, i32) {
    %c0_i32 = arith.constant 0 : i32
    %c0_i32_0 = arith.constant 0 : i32
    %c0_i32_1 = arith.constant 0 : i32
    return %c0_i32, %c0_i32_0 : i32, i32
  }
  func.func @transform_3(%arg0: i32) -> (i32, i32, i32) {
    %c0_i32 = arith.constant 0 : i32
    %c0_i32_0 = arith.constant 0 : i32
    %c0_i32_1 = arith.constant 0 : i32
    %c0_i32_2 = arith.constant 0 : i32
    return %c0_i32, %c0_i32_0, %c0_i32_1 : i32, i32, i32
  }
  func.func @transform_4(%arg0: i32) -> (i32, i32, i32) {
    %c0_i32 = arith.constant 0 : i32
    %c0_i32_0 = arith.constant 0 : i32
    %c0_i32_1 = arith.constant 0 : i32
    %c0_i32_2 = arith.constant 0 : i32
    return %c0_i32, %c0_i32_0, %c0_i32_1 : i32, i32, i32
  }
  func.func @transform_5(%arg0: i32) -> (i32, i32, i32) {
    %c0_i32 = arith.constant 0 : i32
    %c0_i32_0 = arith.constant 0 : i32
    %c0_i32_1 = arith.constant 0 : i32
    %c0_i32_2 = arith.constant 0 : i32
    return %c0_i32, %c0_i32_0, %c0_i32_1 : i32, i32, i32
  }
  func.func @transform_6(%arg0: i32) -> (i32, i32, i32) {
    %c0_i32 = arith.constant 0 : i32
    %c0_i32_0 = arith.constant 0 : i32
    %c0_i32_1 = arith.constant 0 : i32
    %c0_i32_2 = arith.constant 0 : i32
    return %c0_i32, %c0_i32_0, %c0_i32_1 : i32, i32, i32
  }
  func.func @transform_7(%arg0: i32) -> (i32, i32) {
    %c0_i32 = arith.constant 0 : i32
    %c0_i32_0 = arith.constant 0 : i32
    %c0_i32_1 = arith.constant 0 : i32
    return %c0_i32, %c0_i32_0 : i32, i32
  }
  func.func @transform_8(%arg0: i32) -> (i32, i32) {
    %c0_i32 = arith.constant 0 : i32
    %c0_i32_0 = arith.constant 0 : i32
    %c0_i32_1 = arith.constant 0 : i32
    return %c0_i32, %c0_i32_0 : i32, i32
  }
  func.func @transform_9(%arg0: i32) -> (i32, i32, i32) {
    %c0_i32 = arith.constant 0 : i32
    %c0_i32_0 = arith.constant 0 : i32
    %c0_i32_1 = arith.constant 0 : i32
    return %arg0, %c0_i32, %c0_i32_0 : i32, i32, i32
  }
  func.func @transform_10(%arg0: i32) -> (i32, i32, i32) {
    %c0_i32 = arith.constant 0 : i32
    %c0_i32_0 = arith.constant 0 : i32
    %c0_i32_1 = arith.constant 0 : i32
    return %arg0, %c0_i32, %c0_i32_0 : i32, i32, i32
  }
}

</mosaic_0001>

<bundles_post_ra>
// kernel: tpu_custom_call.1
= control target key start
LH: loop header
LB: loop body
LE: loop exit
PB: predicated region body
PF: predicated region fallthrough
CT: control target
= control target key end

     0   :  { %s2906_s0 = inlined_call_operand.vmem [shape: bf16[2,16,128], index: 0, kind: input, shape index: {}]   ;;  %s2907_s1 = inlined_call_operand.vmem [shape: bf16[32,16], index: 1, kind: input, shape index: {}]   ;;  %s2908_s2 = inlined_call_operand.vmem [shape: f32[32,1], index: 2, kind: input, shape index: {}]   ;;  %s2909_s3 = inlined_call_operand.vmem [shape: bf16[9,32,32], index: 3, kind: input, shape index: {}]   ;;  %s2910_s4 = inlined_call_operand.vmem [shape: f32[3,32,1], index: 4, kind: input, shape index: {}]   ;;  %s2911_s5 = inlined_call_operand.vmem [shape: bf16[3,32,32], index: 5, kind: input, shape index: {}]   ;;  %s2912_s6 = inlined_call_operand.vmem [shape: f32[3,32,1], index: 6, kind: input, shape index: {}]   ;;  %s2913_s7 = inlined_call_operand.vmem [shape: bf16[8,32], index: 7, kind: input, shape index: {}]   ;;  %s2914_s8 = inlined_call_operand.vmem [shape: f32[8,1], index: 8, kind: input, shape index: {}]   ;;  %s2915_s9 = inlined_call_operand.hbm [shape: f32[2,32,128], index: 9, kind: output, shape index: {0}]   ;;  %s2916_s10 = inlined_call_operand.hbm [shape: f32[2,8,128], index: 10, kind: output, shape index: {1}]  }
   0x1   :  { %2918 = sst [smem:[#allocation8_spill]] %s2906_s0 }
   0x2   :  { %2919 = sst [smem:[#allocation9_spill]] %s2907_s1 }
   0x3   :  { %16 = vsyncpa [#allocation3], 0 }
   0x4   :  { %18 = vsyncpa [#allocation3 + $0x1], 0 }
   0x5   :  { %19 = vsyncpa [#allocation5], 0 }
   0x6   :  { %21 = vsyncpa [#allocation5 + $0x1], 0  ;;  %s2445_s13 = smov 0   ;;  %s2447_s14 = smov 0  }
   0x7   :  { %s2449_s15 = smov 0   ;;  %s2451_s16 = smov 0  }
   0x8 LB: > { %s2466_s17 = sadd.s32 4294967295, %s2378_s16   ;;  %s1792_s18 = sadd.s32 4294967294, %s2378_s16   ;;  %s2378_s16 = sphi %s2451_s16, %s2935_s16   ;;  %s2374_s15 = sphi %s2449_s15, %s2934_s15   ;;  %s2370_s14 = sphi %s2447_s14, %s2933_s14   ;;  %s2366_s13 = sphi %s2445_s13, %s2932_s13  }
   0x9   : > { %s2470_s19 = sadd.s32 1, %s2378_s16   ;;  %s228_s20 = sadd.s32 1, %s2374_s15 }
   0xa   : > { %s225_s21 = ssub.s32 %s2378_s16, %s2470_s19  ;;  %p238_p0 = scmp.ne.s32.totalorder %s2374_s15, %s2370_s14 }
   0xb   : > { %p226_p1 = scmp.eq.s32.totalorder %s225_s21, 0  ;;  %p239_p2 = scmp.eq.s32.totalorder %s2466_s17, 1 }
   0xc   : > { %p244_p3 = scmp.ne.s32.totalorder %s2370_s14, %s2366_s13  ;;  %p245_p4 = scmp.eq.s32.totalorder %s1792_s18, 1 }
   0xd   : > { %s2481_s22 = scalar_select %p226_p1, %s2374_s15, %s228_s20  }
   0xe   : > { %p2483_p5 = por %p239_p2, %p238_p0  ;;  %p2487_p6 = por %p245_p4, %p244_p3 }
   0xf   : > { %p1795_p7 = scmp.ge.s32.totalorder %s2378_s16, 1  ;;  %p321_p8 = scmp.lt.s32.totalorder %s2378_s16, 3 }
  0x11   : > { %p322_p9 = pnand %p1795_p7, %p321_p8 }
  0x12   : > { %p364_p10 = scmp.lt.s32.totalorder (!%p322_p9), %s2466_s17, 1  ;;  %s2922_s1 = sld [smem:[#allocation9_spill]] (!%p322_p9)  ;;  %vm416_vm0 = vcmask (!%p322_p9), 130048   ;;  %v376_v1 = vld [vmem:[%s2908_s2] sm:$0xff] (!%p322_p9)  ;;  %v378_v2 = vld [vmem:[%s2908_s2 + $0x10] sm:$0xff] (!%p322_p9)  ;;  %v2380_v3 = vmov (!%p322_p9), 0   ;;  %v472_v31 = vlaneseq (!%p322_p9) }
  0x13   : > { %325 = sbr.rel (%p322_p9) target bundleno = 2292 (0x8f4), region = 56  ;;  %2195 = vset.pattern.permute.xlu0 (!%p322_p9), %v2380_v3  ;;  %2196 = vset.pattern.permute.xlu1 (!%p322_p9), %v2380_v3  ;;  %v377_v4 = vld [vmem:[%s2908_s2 + $0x8] sm:$0xff] (!%p322_p9)  ;;  %v379_v5 = vld [vmem:[%s2908_s2 + $0x18] sm:$0xff] (!%p322_p9)  ;;  %s2923_s0 = sld [smem:[#allocation8_spill]] (!%p322_p9)  ;;  %v2260_v20 = vld [vmem:[%s2909_s3 + $0x10] sm:$0xff] (!%p322_p9)   ;;  %vm525_vm1 = vcmask (!%p322_p9), 261120  }
  0x14   : > { %382 = vperm.xlu0 (!%p322_p9), %2195, %v376_v1   ;;  %392 = vperm.xlu1 (!%p322_p9), %2196, %v378_v2   ;;  %s2381_s18 = smov (!%p322_p9), 1   ;;  %v721_v23 = vld [vmem:[%s2910_s4 + $0x8] sm:$0xff] (!%p322_p9)  ;;  %v720_v24 = vld [vmem:[%s2910_s4] sm:$0xff] (!%p322_p9)  ;;  %v723_v25 = vld [vmem:[%s2910_s4 + $0x18] sm:$0xff] (!%p322_p9)  ;;  %v2560_v32 = vand.u32 (!%p322_p9), 127, %v472_v31  ;;  %s2383_s26 = smov (!%p322_p9), 4  }
  0x15   : > { %2019 = vmatprep.mubr.msk.bf16.mxu1 (!%p322_p9), %vm525_vm1, %v2260_v20  ;;  %v722_v26 = vld [vmem:[%s2910_s4 + $0x10] sm:$0xff] (!%p322_p9)  ;;  %v759_v27 = vld [vmem:[%s2912_s6 + $0x8] sm:$0xff] (!%p322_p9)  ;;  %v758_v28 = vld [vmem:[%s2912_s6] sm:$0xff] (!%p322_p9)  ;;  %s2917_s30 = smov (!%p322_p9), 8   ;;  %vm2386_vm10 = vmmov (!%p322_p9), 0   ;;  %s2814_s12 = sand.u32 (!%p322_p9), 1, %s2370_s14  }
  0x16   : > { %v761_v29 = vld [vmem:[%s2912_s6 + $0x18] sm:$0xff] (!%p322_p9)  ;;  %v760_v30 = vld [vmem:[%s2912_s6 + $0x10] sm:$0xff] (!%p322_p9)  ;;  %vm508_vm2 = vcmp.ge.s32.totalorder (!%p322_p9), %v2560_v32, 1  ;;  %vm488_vm4 = vcmp.ge.s32.totalorder (!%p322_p9), %v2560_v32, 2  ;;  %v2262_v51 = vld [vmem:[%s2909_s3] sm:$0xff] (!%p322_p9)   ;;  %vm866_vm6 = vcmp.ge.s32.totalorder (!%p322_p9), %v2560_v32, 4 }
  0x17   : > { %vm2563_vm3 = vmpackc.low (!%p322_p9), %vm508_vm2, %vm508_vm2  ;;  %v2261_v50 = vld [vmem:[%s2909_s3 + $0x18] sm:$0xff] (!%p322_p9)   ;;  %v2263_v54 = vld [vmem:[%s2909_s3 + $0x8] sm:$0xff] (!%p322_p9)   ;;  %vm1245_vm8 = vcmp.ge.s32.totalorder (!%p322_p9), %v2560_v32, 8  ;;  %s1954_s28 = sshll.u32 (!%p322_p9), %s2466_s17, 9  ;;  %s2387_s21 = smov (!%p322_p9), [#allocation2]  }
  0x18   : > { %v2258_v0 = vld [vmem:[%s2922_s1] sm:$0xff] (!%p322_p9)   ;;  %v2259_v7 = vld [vmem:[%s2922_s1 + $0x8] sm:$0xff] (!%p322_p9)   ;;  %387 = vperm.xlu0 (!%p322_p9), %2195, %v377_v4   ;;  %397 = vperm.xlu1 (!%p322_p9), %2196, %v379_v5   ;;  %vm2574_vm5 = vmpackc.low (!%p322_p9), %vm488_vm4, %vm488_vm4 }
  0x19   : > { %2011 = vmatprep.mubr.msk.bf16.mxu0 (!%p322_p9), %vm416_vm0, %v2258_v0  ;;  %v2264_v55 = vld [vmem:[%s2909_s3 + $0x20] sm:$0xff] (!%p322_p9)   ;;  %v2265_v57 = vld [vmem:[%s2909_s3 + $0x28] sm:$0xff] (!%p322_p9)   ;;  %vm2675_vm7 = vmpackc.low (!%p322_p9), %vm866_vm6, %vm866_vm6 }
  0x1a   : > { %s365_s27 = scalar_select %p364_p10, %s2466_s17, 1  ;;  %v2266_v58 = vld [vmem:[%s2911_s5] sm:$0xff]   ;;  %vm1913_vm9 = vmpackc.low %vm1245_vm8, %vm1245_vm8 }
  0x1b   : > { %v1885_v39 = vld [vmem:[%s2912_s6 + $0x20] sm:$0xff] }
  0x1c   : > { %s1953_s20 = sshll.u32 %s365_s27, 3  ;;  %v2278_v32 = vld [vmem:[%s2909_s3 + $0x60] sm:$0xff]   ;;  %s2831_s27 = scalar_lea.hbm %s2915_s9, %s1954_s28 }
  0x1d   : > { %s368_s29 = scalar_lea.vmem %s2923_s0, %s1953_s20  ;;  %s2382_s20 = smov 2  }
  0x1e   : > { %v2257_v6 = vld [vmem:[%s368_s29] sm:$0xff]  }
  0x1f   : > { %2009 = vmatprep.subr.bf16.mxu0 %v2257_v6 }
  0x20   : > { %2010 = vmatpush3.bf16.msra.mxu0 %v2257_v6 }
  0x23   : > { %2012 = vmatmul.mubr.msk.bf16.vlgmr.msra.gmra.mrb[0].mxu0 %vm416_vm0, %v2259_v7 }
  0x24   : > { %2043 = vmatprep.mubr.msk.bf16.mxu0 %vm525_vm1, %v2266_v58 }
  0x93   : > { %v393_v8 = vpop.permute.xlu1 %392  ;;  %v383_v9 = vpop.permute.xlu0 %382 }
  0x97   : > { %v398_v11 = vpop.permute.xlu1 %397  ;;  %v388_v14 = vpop.permute.xlu0 %387 }
  0xf6   : > { %v2013_v10 = vpop.f32.mrb[0].mxu0 }
  0xf7   : > { %v457_v12 = vpop.f32.mrb[1].mxu0  ;;  %v2518_v15 = vadd.f32 %v2013_v10, %v393_v8 }
  0xf8   : > { %v2014_v13 = vpop.f32.mrb[2].mxu0  ;;  %v2522_v18 = vadd.f32 %v457_v12, %v383_v9 }
  0xf9   : > { %v2520_v16 = vadd.f32 %v2014_v13, %v398_v11  ;;  %v460_v17 = vpop.f32.mrb[3].mxu0  ;;  %v2267_v13 = vld [vmem:[%s2911_s5 + $0x8] sm:$0xff]  }
  0xfa   : > { %v2524_v19 = vadd.f32 %v460_v17, %v388_v14 }
  0xfb   : > { %v2202_v21 = vpack.i.bf16 %v2520_v16, %v2518_v15  ;;  %v475_v56 = vpack.c.bf16 %v2520_v16, %v2518_v15 }
  0xfc   : > { %v2197_v22 = vpack.i.bf16 %v2524_v19, %v2522_v18  ;;  %v474_v53 = vpack.c.bf16 %v2524_v19, %v2522_v18 }
  0xfd   : > { %2203 = vrot.lane.b32.xlu1 %v2202_v21, %s2381_s18 }
  0xfe   : > { %2198 = vrot.lane.b32.xlu0 %v2197_v22, %s2381_s18 }
 0x101   : > { %2213 = vrot.lane.b32.xlu1 %v2202_v21, %s2382_s20 }
 0x102   : > { %2208 = vrot.lane.b32.xlu0 %v2197_v22, %s2382_s20 }
 0x105   : > { %731 = vperm.xlu1 %2196, %v721_v23  }
 0x106   : > { %726 = vperm.xlu0 %2195, %v720_v24  }
 0x109   : > { %741 = vperm.xlu1 %2196, %v723_v25  }
 0x10a   : > { %736 = vperm.xlu0 %2195, %v722_v26  }
 0x10d   : > { %769 = vperm.xlu1 %2196, %v759_v27  }
 0x10e   : > { %764 = vperm.xlu0 %2195, %v758_v28  }
 0x111   : > { %779 = vperm.xlu1 %2196, %v761_v29  }
 0x112   : > { %774 = vperm.xlu0 %2195, %v760_v30  }
 0x16f   : > { %v2204_v33 = vpop.permute.xlu1 %2203 }
 0x170   : > { %v2199_v34 = vpop.permute.xlu0 %2198  ;;  %v2206_v35 = vunpack.i.h.bf16 %v2204_v33  ;;  %v2205_v36 = vunpack.i.l.bf16 %v2204_v33 }
 0x171   : > { %v2201_v37 = vunpack.i.h.bf16 %v2199_v34  ;;  %v2200_v38 = vunpack.i.l.bf16 %v2199_v34 }
 0x172   : > { %v1815_v42 = vpack.c.bf16 %v2206_v35, %v2205_v36  ;;  %v2268_v36 = vld [vmem:[%s2909_s3 + $0x40] sm:$0xff]  }
 0x173   : > { %v1812_v40 = vpack.c.bf16 %v2201_v37, %v2200_v38  ;;  %v2214_v45 = vpop.permute.xlu1 %2213  ;;  %v1879_v37 = vld [vmem:[%s2910_s4 + $0x30] sm:$0xff]  ;;  %v1886_v38 = vld [vmem:[%s2912_s6 + $0x28] sm:$0xff] }
 0x174   : > { %v2209_v41 = vpop.permute.xlu0 %2208  ;;  %v2216_v47 = vunpack.i.h.bf16 %v2214_v45  ;;  %v2215_v48 = vunpack.i.l.bf16 %v2214_v45 }
 0x175   : > { %v2211_v43 = vunpack.i.h.bf16 %v2209_v41  ;;  %v2210_v44 = vunpack.i.l.bf16 %v2209_v41  ;;  %2015 = vmatprep.subr.msk.bf16.mxu1 %vm2563_vm3, %v1812_v40  ;;  %v1887_v41 = vld [vmem:[%s2912_s6 + $0x30] sm:$0xff] }
 0x176   : > { %2016 = vmatpush3.bf16.msk.msra.mxu1 %vm2563_vm3, %v1812_v40  ;;  %v1825_v52 = vpack.c.bf16 %v2216_v47, %v2215_v48  ;;  %v1888_v40 = vld [vmem:[%s2912_s6 + $0x38] sm:$0xff] }
 0x177   : > { %2017 = vmatprep.subr.msk.bf16.mxu1 %vm2563_vm3, %v1815_v42  ;;  %v1822_v49 = vpack.c.bf16 %v2211_v43, %v2210_v44 }
 0x17a   : > { %2018 = vmatpush3.bf16.msk.msra.mxu1 %vm2563_vm3, %v1815_v42 }
 0x17b   : > { %2023 = vmatprep.subr.msk.bf16.mxu1 %vm2574_vm5, %v1822_v49 }
 0x17d   : > { %2020 = vmatmul.mubr.msk.bf16.vlgmr.msra.gmra.mrb[0].mxu1 %vm525_vm1, %v2261_v50 }
 0x17e   : > { %2024 = vmatpush3.bf16.msk.msra.mxu1 %vm2574_vm5, %v1822_v49  ;;  %2027 = vmatprep.mubr.msk.bf16.mxu1 %vm525_vm1, %v2262_v51 }
 0x17f   : > { %2025 = vmatprep.subr.msk.bf16.mxu1 %vm2574_vm5, %v1825_v52 }
 0x182   : > { %2026 = vmatpush3.bf16.msk.msra.mxu1 %vm2574_vm5, %v1825_v52 }
 0x183   : > { %2031 = vmatprep.subr.bf16.mxu1 %v474_v53 }
 0x184   : > { %v732_v60 = vpop.permute.xlu1 %731 }
 0x185   : > { %v727_v59 = vpop.permute.xlu0 %726 }
 0x188   : > { %v742_v1 = vpop.permute.xlu1 %741 }
 0x189   : > { %2028 = vmatmul.mubr.msk.bf16.vlgmr.msra.gmra.mrb[0].mxu1 %vm525_vm1, %v2263_v54  ;;  %v737_v61 = vpop.permute.xlu0 %736 }
 0x18a   : > { %2032 = vmatpush3.bf16.msra.mxu1 %v474_v53  ;;  %2035 = vmatprep.mubr.msk.bf16.mxu1 %vm525_vm1, %v2264_v55  ;;  %v2279_v55 = vld [vmem:[%s2909_s3 + $0x68] sm:$0xff]  }
 0x18b   : > { %2033 = vmatprep.subr.bf16.mxu1 %v475_v56 }
 0x18c   : > { %v770_v17 = vpop.permute.xlu1 %769 }
 0x18d   : > { %v765_v14 = vpop.permute.xlu0 %764 }
 0x18e   : > { %2034 = vmatpush3.bf16.msra.mxu1 %v475_v56 }
 0x190   : > { %v780_v24 = vpop.permute.xlu1 %779 }
 0x191   : > { %v775_v20 = vpop.permute.xlu0 %774 }
 0x195   : > { %2036 = vmatmul.mubr.msk.bf16.vlgmr.msra.gmra.mrb[0].mxu1 %vm525_vm1, %v2265_v57 }
 0x268   : > { %v2037_v62 = vpop.f32.mrb[0].mxu1 }
 0x269   : > { %v746_v63 = vadd.f32 %v2037_v62, %v737_v61  ;;  %v701_v0 = vpop.f32.mrb[1].mxu1  ;;  %v2271_v62 = vld [vmem:[%s2909_s3 + $0x38] sm:$0xff]  }
 0x26a   : > { %v744_v2 = vadd.f32 %v727_v59, %v701_v0  ;;  %v2038_v3 = vpop.f32.mrb[2].mxu1  ;;  %v2269_v59 = vld [vmem:[%s2909_s3 + $0x48] sm:$0xff]  }
 0x26b   : > { %v747_v4 = vadd.f32 %v2038_v3, %v742_v1  ;;  %v704_v5 = vpop.f32.mrb[3].mxu1  ;;  %v750_v7 = vmax.f32 %v746_v63, 0.0  ;;  %v2272_v63 = vld [vmem:[%s2909_s3 + $0x50] sm:$0xff]   ;;  %v2273_v1 = vld [vmem:[%s2909_s3 + $0x58] sm:$0xff]  }
 0x26c   : > { %v745_v6 = vadd.f32 %v732_v60, %v704_v5  ;;  %v748_v9 = vmax.f32 %v744_v2, 0.0  ;;  %v2270_v60 = vld [vmem:[%s2909_s3 + $0x30] sm:$0xff]  }
 0x26d   : > { %v751_v8 = vmax.f32 %v747_v4, 0.0  ;;  %v2274_v2 = vld [vmem:[%s2911_s5 + $0x10] sm:$0xff]  }
 0x26e   : > { %v749_v10 = vmax.f32 %v745_v6, 0.0  ;;  %2075 = vmatprep.mubr.msk.bf16.mxu1 %vm525_vm1, %v2274_v2 }
 0x26f   : > { %v757_v11 = vpack.c.bf16 %v751_v8, %v750_v7 }
 0x270   : > { %v756_v12 = vpack.c.bf16 %v749_v10, %v748_v9 }
 0x272   : > { %2039 = vmatprep.subr.bf16.mxu0 %v756_v12 }
 0x273   : > { %2040 = vmatpush3.bf16.msra.mxu0 %v756_v12 }
 0x274   : > { %2041 = vmatprep.subr.bf16.mxu0 %v757_v11 }
 0x277   : > { %2042 = vmatpush3.bf16.msra.mxu0 %v757_v11 }
 0x27a   : > { %2044 = vmatmul.mubr.msk.bf16.vlgmr.msra.gmra.mrb[4].mxu0 %vm525_vm1, %v2267_v13 }
 0x27b   : > { %2051 = vmatprep.mubr.msk.bf16.mxu0 %vm525_vm1, %v2268_v36 }
 0x34d   : > { %v2045_v21 = vpop.f32.mrb[4].mxu0 }
 0x34e   : > { %v841_v22 = vadd.f32 %v2045_v21, %v775_v20  ;;  %v832_v23 = vpop.f32.mrb[5].mxu0 }
 0x34f   : > { %v833_v25 = vadd.f32 %v832_v23, %v765_v14  ;;  %v2046_v26 = vpop.f32.mrb[6].mxu0 }
 0x350   : > { %v844_v27 = vadd.f32 %v2046_v26, %v780_v24  ;;  %v835_v28 = vpop.f32.mrb[7].mxu0  ;;  %v2621_v30 = vadd.f32 %v841_v22, %v2518_v15 }
 0x351   : > { %v836_v29 = vadd.f32 %v835_v28, %v770_v17  ;;  %v2627_v33 = vadd.f32 %v833_v25, %v2522_v18  ;;  %v1877_v18 = vld [vmem:[%s2910_s4 + $0x20] sm:$0xff]  ;;  %v2275_v25 = vld [vmem:[%s2911_s5 + $0x18] sm:$0xff]  }
 0x352   : > { %v2624_v31 = vadd.f32 %v844_v27, %v2520_v16  ;;  %v1878_v16 = vld [vmem:[%s2910_s4 + $0x28] sm:$0xff] }
 0x353   : > { %v2630_v34 = vadd.f32 %v836_v29, %v2524_v19  ;;  %v1880_v19 = vld [vmem:[%s2910_s4 + $0x38] sm:$0xff] }
 0x354   : > { %v2222_v35 = vpack.i.bf16 %v2624_v31, %v2621_v30  ;;  %v852_v0 = vpack.c.bf16 %v2624_v31, %v2621_v30 }
 0x355   : > { %v2217_v15 = vpack.i.bf16 %v2630_v34, %v2627_v33  ;;  %v851_v46 = vpack.c.bf16 %v2630_v34, %v2627_v33 }
 0x356   : > { %2223 = vrot.lane.b32.xlu1 %v2222_v35, %s2382_s20 }
 0x357   : > { %2218 = vrot.lane.b32.xlu0 %v2217_v15, %s2382_s20  ;;  %s1796_s20 = sshll.u32 %s2814_s12, 5 }
 0x358   : > { %s356_s18 = scalar_lea.vmem [#allocation2], %s1796_s20 }
 0x359   : > { %s1685_s25 = sshll.u32 %s356_s18, 4  ;;  %s2825_s25 = int_to_ptr.vmem [resolvable:$true] %s1685_s25 }
 0x35a   : > { %2233 = vrot.lane.b32.xlu1 %v2222_v35, %s2383_s26 }
 0x35b   : > { %2228 = vrot.lane.b32.xlu0 %v2217_v15, %s2383_s26 }
 0x35e   : > { %1108 = vperm.xlu1 %2196, %v1878_v16  }
 0x35f   : > { %1103 = vperm.xlu0 %2195, %v1877_v18  }
 0x362   : > { %1118 = vperm.xlu1 %2196, %v1880_v19  }
 0x363   : > { %1113 = vperm.xlu0 %2195, %v1879_v37  }
 0x366   : > { %1148 = vperm.xlu1 %2196, %v1886_v38  }
 0x367   : > { %1143 = vperm.xlu0 %2195, %v1885_v39  }
 0x36a   : > { %1158 = vperm.xlu1 %2196, %v1888_v40  }
 0x36b   : > { %1153 = vperm.xlu0 %2195, %v1887_v41  }
 0x3c8   : > { %v2224_v42 = vpop.permute.xlu1 %2223 }
 0x3c9   : > { %v2219_v43 = vpop.permute.xlu0 %2218  ;;  %v2226_v44 = vunpack.i.h.bf16 %v2224_v42  ;;  %v2225_v45 = vunpack.i.l.bf16 %v2224_v42 }
 0x3ca   : > { %v2221_v47 = vunpack.i.h.bf16 %v2219_v43  ;;  %v2220_v48 = vunpack.i.l.bf16 %v2219_v43 }
 0x3cb   : > { %v1855_v51 = vpack.c.bf16 %v2226_v44, %v2225_v45  ;;  %v2276_v44 = vld [vmem:[%s2909_s3 + $0x70] sm:$0xff]  }
 0x3cc   : > { %v1852_v49 = vpack.c.bf16 %v2221_v47, %v2220_v48  ;;  %v2234_v54 = vpop.permute.xlu1 %2233  ;;  %v1931_v45 = vld [vmem:[%s2910_s4 + $0x50] sm:$0xff]  ;;  %v1938_v47 = vld [vmem:[%s2912_s6 + $0x48] sm:$0xff]  ;;  %v1937_v48 = vld [vmem:[%s2912_s6 + $0x40] sm:$0xff] }
 0x3cd   : > { %v2229_v50 = vpop.permute.xlu0 %2228  ;;  %v2236_v56 = vunpack.i.h.bf16 %v2234_v54  ;;  %v2235_v57 = vunpack.i.l.bf16 %v2234_v54 }
 0x3ce   : > { %v2231_v52 = vunpack.i.h.bf16 %v2229_v50  ;;  %v2230_v53 = vunpack.i.l.bf16 %v2229_v50  ;;  %2047 = vmatprep.subr.msk.bf16.mxu0 %vm2574_vm5, %v1852_v49  ;;  %v1939_v50 = vld [vmem:[%s2912_s6 + $0x50] sm:$0xff] }
 0x3cf   : > { %2048 = vmatpush3.bf16.msk.msra.mxu0 %vm2574_vm5, %v1852_v49  ;;  %v1865_v61 = vpack.c.bf16 %v2236_v56, %v2235_v57  ;;  %v1940_v49 = vld [vmem:[%s2912_s6 + $0x58] sm:$0xff] }
 0x3d0   : > { %2049 = vmatprep.subr.msk.bf16.mxu0 %vm2574_vm5, %v1855_v51  ;;  %v1862_v58 = vpack.c.bf16 %v2231_v52, %v2230_v53 }
 0x3d3   : > { %2050 = vmatpush3.bf16.msk.msra.mxu0 %vm2574_vm5, %v1855_v51  ;;  %v1616_v51 = vld [vmem:[%s2914_s8] sm:$0xff] }
 0x3d4   : > { %2055 = vmatprep.subr.msk.bf16.mxu0 %vm2675_vm7, %v1862_v58 }
 0x3d6   : > { %2052 = vmatmul.mubr.msk.bf16.vlgmr.msra.gmra.mrb[8].mxu0 %vm525_vm1, %v2269_v59 }
 0x3d7   : > { %2056 = vmatpush3.bf16.msk.msra.mxu0 %vm2675_vm7, %v1862_v58  ;;  %2059 = vmatprep.mubr.msk.bf16.mxu0 %vm525_vm1, %v2270_v60 }
 0x3d8   : > { %2057 = vmatprep.subr.msk.bf16.mxu0 %vm2675_vm7, %v1865_v61 }
 0x3db   : > { %2058 = vmatpush3.bf16.msk.msra.mxu0 %vm2675_vm7, %v1865_v61 }
 0x3dc   : > { %2063 = vmatprep.subr.bf16.mxu0 %v851_v46 }
 0x3dd   : > { %v1109_v4 = vpop.permute.xlu1 %1108 }
 0x3de   : > { %v1104_v3 = vpop.permute.xlu0 %1103 }
 0x3e1   : > { %v1119_v9 = vpop.permute.xlu1 %1118 }
 0x3e2   : > { %2060 = vmatmul.mubr.msk.bf16.vlgmr.msra.gmra.mrb[8].mxu0 %vm525_vm1, %v2271_v62  ;;  %v1114_v5 = vpop.permute.xlu0 %1113 }
 0x3e3   : > { %2064 = vmatpush3.bf16.msra.mxu0 %v851_v46  ;;  %2067 = vmatprep.mubr.msk.bf16.mxu0 %vm525_vm1, %v2272_v63 }
 0x3e4   : > { %2065 = vmatprep.subr.bf16.mxu0 %v852_v0 }
 0x3e5   : > { %v1149_v27 = vpop.permute.xlu1 %1148 }
 0x3e6   : > { %v1144_v26 = vpop.permute.xlu0 %1143 }
 0x3e7   : > { %2066 = vmatpush3.bf16.msra.mxu0 %v852_v0 }
 0x3e9   : > { %v1159_v15 = vpop.permute.xlu1 %1158 }
 0x3ea   : > { %v1154_v28 = vpop.permute.xlu0 %1153 }
 0x3ee   : > { %2068 = vmatmul.mubr.msk.bf16.vlgmr.msra.gmra.mrb[8].mxu0 %vm525_vm1, %v2273_v1 }
 0x4c1   : > { %v2069_v6 = vpop.f32.mrb[8].mxu0 }
 0x4c2   : > { %v1123_v7 = vadd.f32 %v2069_v6, %v1114_v5  ;;  %v1077_v8 = vpop.f32.mrb[9].mxu0  ;;  %v2280_v6 = vld [vmem:[%s2909_s3 + $0x80] sm:$0xff]  }
 0x4c3   : > { %v1121_v10 = vadd.f32 %v1104_v3, %v1077_v8  ;;  %v2070_v11 = vpop.f32.mrb[10].mxu0  ;;  %v2277_v3 = vld [vmem:[%s2909_s3 + $0x78] sm:$0xff]   ;;  %v2281_v8 = vld [vmem:[%s2909_s3 + $0x88] sm:$0xff]  }
 0x4c4   : > { %v1124_v12 = vadd.f32 %v2070_v11, %v1119_v9  ;;  %v1080_v13 = vpop.f32.mrb[11].mxu0  ;;  %v1127_v17 = vmax.f32 %v1123_v7, 0.0  ;;  %v2282_v9 = vld [vmem:[%s2911_s5 + $0x20] sm:$0xff]  }
 0x4c5   : > { %v1122_v14 = vadd.f32 %v1109_v4, %v1080_v13  ;;  %v1125_v21 = vmax.f32 %v1121_v10, 0.0  ;;  %2107 = vmatprep.mubr.msk.bf16.mxu0 %vm525_vm1, %v2282_v9 }
 0x4c6   : > { %v1128_v20 = vmax.f32 %v1124_v12, 0.0 }
 0x4c7   : > { %v1126_v22 = vmax.f32 %v1122_v14, 0.0 }
 0x4c8   : > { %v1135_v23 = vpack.c.bf16 %v1128_v20, %v1127_v17 }
 0x4c9   : > { %v1134_v24 = vpack.c.bf16 %v1126_v22, %v1125_v21 }
 0x4cb   : > { %2071 = vmatprep.subr.bf16.mxu1 %v1134_v24 }
 0x4cc   : > { %2072 = vmatpush3.bf16.msra.mxu1 %v1134_v24 }
 0x4cd   : > { %2073 = vmatprep.subr.bf16.mxu1 %v1135_v23 }
 0x4d0   : > { %2074 = vmatpush3.bf16.msra.mxu1 %v1135_v23 }
 0x4d3   : > { %2076 = vmatmul.mubr.msk.bf16.vlgmr.msra.gmra.mrb[4].mxu1 %vm525_vm1, %v2275_v25 }
 0x4d4   : > { %2083 = vmatprep.mubr.msk.bf16.mxu1 %vm525_vm1, %v2276_v44 }
 0x5a6   : > { %v2077_v29 = vpop.f32.mrb[4].mxu1 }
 0x5a7   : > { %v1220_v35 = vadd.f32 %v2077_v29, %v1154_v28  ;;  %v1211_v36 = vpop.f32.mrb[5].mxu1 }
 0x5a8   : > { %v1212_v16 = vadd.f32 %v1211_v36, %v1144_v26  ;;  %v2078_v18 = vpop.f32.mrb[6].mxu1 }
 0x5a9   : > { %v1223_v19 = vadd.f32 %v2078_v18, %v1159_v15  ;;  %v1214_v37 = vpop.f32.mrb[7].mxu1  ;;  %v2722_v39 = vadd.f32 %v1220_v35, %v2621_v30  ;;  %v2283_v15 = vld [vmem:[%s2911_s5 + $0x28] sm:$0xff]  }
 0x5aa   : > { %v1215_v38 = vadd.f32 %v1214_v37, %v1149_v27  ;;  %v2728_v41 = vadd.f32 %v1212_v16, %v2627_v33  ;;  %v1929_v33 = vld [vmem:[%s2910_s4 + $0x40] sm:$0xff]  ;;  %v2385_v16 = vmov 0.0  }
 0x5ab   : > { %v2725_v40 = vadd.f32 %v1223_v19, %v2624_v31  ;;  %v1930_v31 = vld [vmem:[%s2910_s4 + $0x48] sm:$0xff] }
 0x5ac   : > { %v2731_v42 = vadd.f32 %v1215_v38, %v2630_v34  ;;  %v1932_v34 = vld [vmem:[%s2910_s4 + $0x58] sm:$0xff] }
 0x5ad   : > { %v2242_v43 = vpack.i.bf16 %v2725_v40, %v2722_v39  ;;  %v1231_v7 = vpack.c.bf16 %v2725_v40, %v2722_v39 }
 0x5ae   : > { %v2237_v30 = vpack.i.bf16 %v2731_v42, %v2728_v41  ;;  %v1230_v5 = vpack.c.bf16 %v2731_v42, %v2728_v41 }
 0x5af   : > { %2243 = vrot.lane.b32.xlu1 %v2242_v43, %s2383_s26 }
 0x5b0   : > { %2238 = vrot.lane.b32.xlu0 %v2237_v30, %s2383_s26  ;;  %s2288_s26 = sshll.u32 %s2387_s21, 4  ;;  %s2289_s26 = int_to_ptr.vmem [resolvable:$false] %s2288_s26 }
 0x5b1   : > { %p2291_p0 = scmp.lt.s32.totalorder %s2825_s25, %s2289_s26 }
 0x5b3   : > { %2253 = vrot.lane.b32.xlu1 %v2242_v43, %s2917_s30 }
 0x5b4   : > { %2248 = vrot.lane.b32.xlu0 %v2237_v30, %s2917_s30  ;;  %s2284_s30 = scalar_lea.vmem %s2825_s25, 512 }
 0x5b5   : > { %p2285_p11 = scmp.ne.s32.totalorder %s2825_s25, %s2284_s30 }
 0x5b7   : > { %1487 = vperm.xlu1 %2196, %v1930_v31   ;;  %p2286_p12 = pnand %p2285_p11, %p2483_p5 }
 0x5b8   : > { %1482 = vperm.xlu0 %2195, %v1929_v33  }
 0x5b9   : > { %p2287_p13 = pneg %p2286_p12 }
 0x5bb   : > { %1497 = vperm.xlu1 %2196, %v1932_v34  }
 0x5bc   : > { %1492 = vperm.xlu0 %2195, %v1931_v45  }
 0x5bf   : > { %1527 = vperm.xlu1 %2196, %v1938_v47  }
 0x5c0   : > { %1522 = vperm.xlu0 %2195, %v1937_v48  }
 0x5c3   : > { %1537 = vperm.xlu1 %2196, %v1940_v49  }
 0x5c4   : > { %1532 = vperm.xlu0 %2195, %v1939_v50  }
 0x5c8   : > { %1619 = vperm.xlu0 %2195, %v1616_v51  }
 0x621   : > { %v2244_v52 = vpop.permute.xlu1 %2243 }
 0x622   : > { %v2239_v53 = vpop.permute.xlu0 %2238  ;;  %v2246_v54 = vunpack.i.h.bf16 %v2244_v52  ;;  %v2245_v56 = vunpack.i.l.bf16 %v2244_v52 }
 0x623   : > { %v2241_v57 = vunpack.i.h.bf16 %v2239_v53  ;;  %v2240_v58 = vunpack.i.l.bf16 %v2239_v53 }
 0x624   : > { %v1907_v61 = vpack.c.bf16 %v2246_v54, %v2245_v56 }
 0x625   : > { %v1904_v59 = vpack.c.bf16 %v2241_v57, %v2240_v58  ;;  %v2254_v63 = vpop.permute.xlu1 %2253 }
 0x626   : > { %v2249_v60 = vpop.permute.xlu0 %2248  ;;  %v2256_v0 = vunpack.i.h.bf16 %v2254_v63  ;;  %v2255_v1 = vunpack.i.l.bf16 %v2254_v63 }
 0x627   : > { %v2251_v46 = vunpack.i.h.bf16 %v2249_v60  ;;  %v2250_v62 = vunpack.i.l.bf16 %v2249_v60  ;;  %2079 = vmatprep.subr.msk.bf16.mxu1 %vm2675_vm7, %v1904_v59 }
 0x628   : > { %2080 = vmatpush3.bf16.msk.msra.mxu1 %vm2675_vm7, %v1904_v59  ;;  %v1917_v4 = vpack.c.bf16 %v2256_v0, %v2255_v1 }
 0x629   : > { %2081 = vmatprep.subr.msk.bf16.mxu1 %vm2675_vm7, %v1907_v61  ;;  %v1914_v2 = vpack.c.bf16 %v2251_v46, %v2250_v62 }
 0x62c   : > { %2082 = vmatpush3.bf16.msk.msra.mxu1 %vm2675_vm7, %v1907_v61 }
 0x62d   : > { %2087 = vmatprep.subr.msk.bf16.mxu1 %vm1913_vm9, %v1914_v2 }
 0x62f   : > { %2084 = vmatmul.mubr.msk.bf16.vlgmr.msra.gmra.mrb[8].mxu1 %vm525_vm1, %v2277_v3 }
 0x630   : > { %2088 = vmatpush3.bf16.msk.msra.mxu1 %vm1913_vm9, %v1914_v2  ;;  %2091 = vmatprep.mubr.msk.bf16.mxu1 %vm525_vm1, %v2278_v32 }
 0x631   : > { %2089 = vmatprep.subr.msk.bf16.mxu1 %vm1913_vm9, %v1917_v4 }
 0x634   : > { %2090 = vmatpush3.bf16.msk.msra.mxu1 %vm1913_vm9, %v1917_v4 }
 0x635   : > { %2095 = vmatprep.subr.bf16.mxu1 %v1230_v5 }
 0x636   : > { %v1488_v11 = vpop.permute.xlu1 %1487 }
 0x637   : > { %v1483_v10 = vpop.permute.xlu0 %1482 }
 0x63a   : > { %v1498_v20 = vpop.permute.xlu1 %1497 }
 0x63b   : > { %2092 = vmatmul.mubr.msk.bf16.vlgmr.msra.gmra.mrb[8].mxu1 %vm525_vm1, %v2279_v55  ;;  %v1493_v12 = vpop.permute.xlu0 %1492 }
 0x63c   : > { %2096 = vmatpush3.bf16.msra.mxu1 %v1230_v5  ;;  %2099 = vmatprep.mubr.msk.bf16.mxu1 %vm525_vm1, %v2280_v6 }
 0x63d   : > { %2097 = vmatprep.subr.bf16.mxu1 %v1231_v7 }
 0x63e   : > { %v1528_v19 = vpop.permute.xlu1 %1527 }
 0x63f   : > { %v1523_v18 = vpop.permute.xlu0 %1522 }
 0x640   : > { %2098 = vmatpush3.bf16.msra.mxu1 %v1231_v7 }
 0x642   : > { %v1538_v30 = vpop.permute.xlu1 %1537 }
 0x643   : > { %v1533_v37 = vpop.permute.xlu0 %1532 }
 0x647   : > { %2100 = vmatmul.mubr.msk.bf16.vlgmr.msra.gmra.mrb[8].mxu1 %vm525_vm1, %v2281_v8 }
 0x71a   : > { %v2101_v13 = vpop.f32.mrb[8].mxu1 }
 0x71b   : > { %v1502_v14 = vadd.f32 %v2101_v13, %v1493_v12  ;;  %v1456_v17 = vpop.f32.mrb[9].mxu1 }
 0x71c   : > { %v1500_v21 = vadd.f32 %v1483_v10, %v1456_v17  ;;  %v2102_v22 = vpop.f32.mrb[10].mxu1 }
 0x71d   : > { %v1503_v23 = vadd.f32 %v2102_v22, %v1498_v20  ;;  %v1459_v24 = vpop.f32.mrb[11].mxu1  ;;  %v1506_v26 = vmax.f32 %v1502_v14, 0.0 }
 0x71e   : > { %v1501_v25 = vadd.f32 %v1488_v11, %v1459_v24  ;;  %v1504_v28 = vmax.f32 %v1500_v21, 0.0 }
 0x71f   : > { %v1507_v27 = vmax.f32 %v1503_v23, 0.0 }
 0x720   : > { %v1505_v29 = vmax.f32 %v1501_v25, 0.0 }
 0x721   : > { %v1514_v35 = vpack.c.bf16 %v1507_v27, %v1506_v26 }
 0x722   : > { %v1513_v36 = vpack.c.bf16 %v1505_v29, %v1504_v28 }
 0x724   : > { %2103 = vmatprep.subr.bf16.mxu0 %v1513_v36 }
 0x725   : > { %2104 = vmatpush3.bf16.msra.mxu0 %v1513_v36 }
 0x726   : > { %2105 = vmatprep.subr.bf16.mxu0 %v1514_v35 }
 0x729   : > { %2106 = vmatpush3.bf16.msra.mxu0 %v1514_v35 }
 0x72a   : > { %2111 = vmatprep.subr.bf16.mxu0 %v2385_v16 }
 0x72c   : > { %2108 = vmatmul.mubr.msk.bf16.vlgmr.msra.gmra.mrb[12].mxu0 %vm525_vm1, %v2283_v15 }
 0x72d   : > { %2115 = vmatprep.mubr.msk.bf16.mxu0 %vm2386_vm10, %v2385_v16 }
 0x7ff   : > { %v2109_v38 = vpop.f32.mrb[12].mxu0 }
 0x800   : > { %v1599_v43 = vadd.f32 %v2109_v38, %v1533_v37  ;;  %v1590_v44 = vpop.f32.mrb[13].mxu0 }
 0x801   : > { %v1591_v31 = vadd.f32 %v1590_v44, %v1523_v18  ;;  %v2110_v33 = vpop.f32.mrb[14].mxu0 }
 0x802   : > { %v1607_v34 = vadd.f32 %v1599_v43, %v2722_v39  ;;  %v1602_v45 = vadd.f32 %v2110_v33, %v1538_v30  ;;  %v1593_v47 = vpop.f32.mrb[15].mxu0  ;;  %v1613_v39 = vld [vmem:[%s2913_s7] sm:$0xf] }
 0x803   : > { %v1605_v48 = vadd.f32 %v1591_v31, %v2728_v41  ;;  %v1594_v49 = vadd.f32 %v1593_v47, %v1528_v19 }
 0x804   : > { %1611 = vst [vmem:[%s356_s18 + $0x10] sm:$0xff] %v1607_v34  ;;  %v1608_v50 = vadd.f32 %v1602_v45, %v2725_v40 }
 0x805   : > { %1609 = vst [vmem:[%s356_s18] sm:$0xff] %v1605_v48  ;;  %v1606_v51 = vadd.f32 %v1594_v49, %v2731_v42 }
 0x806   : > { %1612 = vst [vmem:[%s356_s18 + $0x18] sm:$0xff] %v1608_v50  ;;  %v1615_v52 = vpack.c.bf16 %v1608_v50, %v1607_v34 }
 0x807   : > { %1610 = vst [vmem:[%s356_s18 + $0x8] sm:$0xff] %v1606_v51  ;;  %v1614_v53 = vpack.c.bf16 %v1606_v51, %v1605_v48  ;;  %s2290_s18 = scalar_lea.vmem %s2289_s26, 1024 }
 0x808   : > { %p2292_p1 = scmp.lt.s32.totalorder %s2290_s18, %s2284_s30 }
 0x809   : > { %2112 = vmatpush3.bf16.msra.mxu0 %v1614_v53 }
 0x80a   : > { %2113 = vmatprep.subr.bf16.mxu0 %v2385_v16  ;;  %p2293_p2 = por %p2292_p1, %p2291_p0 }
 0x80c   : > { %p2294_p3 = pnand %p2293_p2, %p2287_p13 }
 0x80d   : > { %2114 = vmatpush3.bf16.msra.mxu0 %v1615_v52 }
 0x810   : > { %2116 = vmatmul.mubr.msk.bf16.vlgmr.msra.gmra.mrb[16].mxu0 %vm525_vm1, %v1613_v39 }
 0x811   : > { %2297 = shalt.err (!%p2294_p3)
}
 0x812   : > { %s2298_s28 = scalar_lea.hbm %s2831_s27, 512  ;;  %s2302_s21 = scalar_lea.hbm %s2915_s9, 1024 }
 0x813   : > { %p2299_p4 = scmp.ne.s32.totalorder %s2831_s27, %s2298_s28  ;;  %p2303_p9 = scmp.lt.u32.totalorder %s2831_s27, %s2915_s9 }
 0x814   : > { %p2304_p10 = scmp.lt.u32.totalorder %s2302_s21, %s2298_s28  ;;  %p2306_p12 = scmp.lt.u32.totalorder %s2298_s28, %s2831_s27 }
 0x815   : > { %p2300_p7 = pnand %p2299_p4, %p2483_p5 }
 0x816   : > { %p2305_p11 = por %p2304_p10, %p2303_p9 }
 0x817   : > { %p2301_p8 = pneg %p2300_p7 }
 0x818   : > { %p2307_p13 = por %p2306_p12, %p2305_p11 }
 0x81a   : > { %p2308_p0 = pnand %p2307_p13, %p2301_p8 }
 0x81c   : > { %2311 = shalt.err (!%p2308_p0)
}
 0x81d   : > { %s2388_s30 = smov 128   ;;  %s2930_s18 = smov 8   ;;  %v1620_v40 = vpop.permute.xlu0 %1619 }
 0x81e   : > { %s2931_s0 = scalar_lea.sflag [#allocation3], %s2814_s12  ;;  %s1797_s20 = sshll.u32 %s2814_s12, 3 }
 0x81f   : > { %2143 = dma.vmem_to_hbm [thread:$0]  (%p2483_p5), %s2825_s25, 512, %s2831_s27, %s2931_s0, %s2388_s30, %s2388_s30, %s2930_s18  }
 0x820   : > { %s1950_s29 = sshll.u32 %s2466_s17, 7  ;;  %s363_s11 = scalar_lea.vmem [#allocation4], %s1797_s20 }
 0x821   : > { %s1701_s28 = sshll.u32 %s363_s11, 4  ;;  %s2863_s1 = scalar_lea.hbm %s2916_s10, %s1950_s29  ;;  %s2865_s28 = int_to_ptr.vmem [resolvable:$true] %s1701_s28 }
 0x822   : > { %s1672_s0 = scalar_lea.sflag [#allocation5], %s2814_s12  ;;  %s2312_s17 = scalar_lea.vmem %s2865_s28, 128 }
 0x823   : > { %p2313_p1 = scmp.ne.s32.totalorder %s2865_s28, %s2312_s17  ;;  %s2389_s25 = smov [#allocation4]  }
 0x824   : > { %s2316_s27 = sshll.u32 %s2389_s25, 4  ;;  %s2317_s27 = int_to_ptr.vmem [resolvable:$false] %s2316_s27 }
 0x825   : > { %p2314_p2 = pnand %p2313_p1, %p2483_p5  ;;  %s2318_s30 = scalar_lea.vmem %s2317_s27, 256 }
 0x826   : > { %p2319_p4 = scmp.lt.s32.totalorder %s2865_s28, %s2317_s27  ;;  %p2320_p7 = scmp.lt.s32.totalorder %s2318_s30, %s2312_s17 }
 0x827   : > { %p2315_p3 = pneg %p2314_p2 }
 0x828   : > { %p2321_p8 = por %p2320_p7, %p2319_p4 }
 0x82a   : > { %p2322_p9 = pnand %p2321_p8, %p2315_p3 }
 0x8e3   : > { %v1659_v41 = vpop.f32.mrb[16].mxu0 }
 0x8e4   : > { %v1660_v42 = vadd.f32 %v1659_v41, %v1620_v40  ;;  %v2117_v54 = vpop.f32.mrb[17].mxu0 }
 0x8e5   : > { %v1662_v56 = vpop.f32.mrb[18].mxu0 }
 0x8e6   : > { %1665 = vst [vmem:[%s363_s11] sm:$0xff] %v1660_v42  ;;  %v2118_v57 = vpop.f32.mrb[19].mxu0 }
 0x8e7   : > { %2325 = shalt.err (!%p2322_p9)
}
 0x8e8   : > { %s2326_s12 = scalar_lea.hbm %s2863_s1, 128  ;;  %s2330_s29 = scalar_lea.hbm %s2916_s10, 256 }
 0x8e9   : > { %p2327_p10 = scmp.ne.s32.totalorder %s2863_s1, %s2326_s12  ;;  %p2331_p13 = scmp.lt.u32.totalorder %s2863_s1, %s2916_s10 }
 0x8ea   : > { %p2332_p0 = scmp.lt.u32.totalorder %s2330_s29, %s2326_s12  ;;  %p2334_p2 = scmp.lt.u32.totalorder %s2326_s12, %s2863_s1 }
 0x8eb   : > { %p2328_p11 = pnand %p2327_p10, %p2483_p5 }
 0x8ec   : > { %p2333_p1 = por %p2332_p0, %p2331_p13 }
 0x8ed   : > { %p2329_p12 = pneg %p2328_p11 }
 0x8ee   : > { %p2335_p3 = por %p2334_p2, %p2333_p1 }
 0x8f0   : > { %p2336_p4 = pnand %p2335_p3, %p2329_p12 }
 0x8f2   : > { %2339 = shalt.err (!%p2336_p4)
}
 0x8f3   : > { %2144 = dma.vmem_to_hbm [thread:$0]  (%p2483_p5), %s2865_s28, 128, %s2863_s1, %s1672_s0  }
 0x8f4 PF: > { %p2154_p7 = scmp.ge.s32.totalorder %s2378_s16, 2  ;;  %s1713_s26 = sand.u32 1, %s2366_s13  }
 0x8f5   : > { %s1714_s17 = scalar_lea.sflag [#allocation3], %s1713_s26 }
 0x8f6   : > { %p2148_p8 = pnand %p2154_p7, %p2487_p6 }
 0x8f8   : > { %2357 = dma.done.wait (!%p2148_p8), %s1714_s17, 512  }
 0x8f9   : > { %2359 = vsyncadd (!%p2148_p8), %s1714_s17, 4294966784  ;;  %s1723_s25 = scalar_lea.sflag [#allocation5], %s1713_s26 }
 0x8fa   : > { %2361 = dma.done.wait (!%p2148_p8), %s1723_s25, 128  }
 0x8fb   : > { %2363 = vsyncadd (!%p2148_p8), %s1723_s25, 4294967168  ;;  %p24_p5 = scmp.ge.s32.totalorder %s2470_s19, 4   ;;  %s2932_s13 = smov %s2370_s14 }
 0x8fc   : > { %s2933_s14 = smov %s2374_s15  ;;  %s2934_s15 = smov %s2481_s22 }
 0x8fd   : > { %s2935_s16 = smov %s2470_s19  ;;  %26 = sbr.rel (!%p24_p5) target bundleno = 8 (0x8), region = 122 }
 0x904   :  { %1728 = vsyncpa [#allocation3], 1 }
 0x905   :  { %1730 = vsyncpa [#allocation3 + $0x1], 1 }
 0x906   :  { %1731 = vsyncpa [#allocation5], 1 }
 0x907   :  { %1733 = vsyncpa [#allocation5 + $0x1], 1 }

</bundles_post_ra>
